<compile_context>
chip_gen: v7x
topology: tpu7x:2x2x1
jax: 0.10.0
libtpu: 0.0.40
codegen_flags: <defaults>
</compile_context>

<pallas_src>
import jax
import jax.numpy as jnp
from jax.experimental import pallas as pl
from jax.experimental.pallas import tpu as pltpu


def _prompt_concat_kernel(ctx_ref, prefix_ref, suffix_ref, out_ref):
    # ctx_ref:    (n_ctx, D)              -- shared (same block index every grid step)
    # prefix_ref: (TC, 1, D)              -- SOS-token embeddings for TC classes
    # suffix_ref: (TC, L - 1 - n_ctx, D)  -- classname + EOS/pad embeddings
    # out_ref:    (TC, L, D)
    tc = out_ref.shape[0]
    n_ctx, d = ctx_ref.shape

    # Direct slice stores into the output block (no concatenate temporary).
    out_ref[:, 0:1, :] = prefix_ref[...]
    # Single hoisted broadcast of the shared context vectors for the whole block.
    out_ref[:, 1:1 + n_ctx, :] = jnp.broadcast_to(
        ctx_ref[...][None, :, :], (tc, n_ctx, d)
    )
    out_ref[:, 1 + n_ctx:, :] = suffix_ref[...]


def _pick_classes_per_block(n_cls, n_ctx, suffix_len, seq_len, d, itemsize):
    """Largest classes-per-block whose double-buffered working set fits ~24 MiB."""
    per_class_bytes = (1 + suffix_len + seq_len) * d * itemsize  # prefix+suffix+out
    ctx_bytes = n_ctx * d * itemsize
    per_buffer_budget = 12 * 1024 * 1024  # x2 (double buffering) ~= 24 MiB total
    tc = (per_buffer_budget - ctx_bytes) // max(per_class_bytes, 1)
    # Cap at 32 classes/block: CLIP-scale shapes (L=77, D=512, f32) stay well inside
    # v7x's 64 MiB VMEM while the per-step DMAs are already ~MB-sized (HBM roofline).
    return int(max(1, min(n_cls, tc, 32)))


def prompt_learner_forward(ctx, token_prefix, token_suffix, classes_per_block=None):
    """Pallas implementation of PromptLearner.forward() for class_token_position='end'.

    Args:
      ctx:          (n_ctx, D)  learnable context vectors
      token_prefix: (n_cls, 1, D)
      token_suffix: (n_cls, L - 1 - n_ctx, D)
      classes_per_block: optional override of the classes-per-grid-step tile.
    Returns:
      prompts: (n_cls, L, D)
    """
    n_ctx, d = ctx.shape
    n_cls, one, d2 = token_prefix.shape
    assert one == 1 and d2 == d
    assert token_suffix.shape[0] == n_cls and token_suffix.shape[2] == d
    assert token_prefix.dtype == ctx.dtype and token_suffix.dtype == ctx.dtype
    suffix_len = token_suffix.shape[1]
    seq_len = 1 + n_ctx + suffix_len

    if classes_per_block is None:
        classes_per_block = _pick_classes_per_block(
            n_cls, n_ctx, suffix_len, seq_len, d, jnp.dtype(ctx.dtype).itemsize
        )
    tc = int(classes_per_block)
    grid = (pl.cdiv(n_cls, tc),)

    return pl.pallas_call(
        _prompt_concat_kernel,
        out_shape=jax.ShapeDtypeStruct((n_cls, seq_len, d), ctx.dtype),
        grid_spec=pltpu.PrefetchScalarGridSpec(
            num_scalar_prefetch=0,
            grid=grid,
            in_specs=[
                # ctx is shared across all classes (constant block index -> fetched once).
                pl.BlockSpec((n_ctx, d), lambda i: (0, 0)),
                # TC classes' prefix / suffix tiles per grid step.
                pl.BlockSpec((tc, 1, d), lambda i: (i, 0, 0)),
                pl.BlockSpec((tc, suffix_len, d), lambda i: (i, 0, 0)),
            ],
            out_specs=pl.BlockSpec((tc, seq_len, d), lambda i: (i, 0, 0)),
        ),
        compiler_params=pltpu.CompilerParams(
            dimension_semantics=("parallel",),
            vmem_limit_bytes=32 * 1024 * 1024,
        ),
    )(ctx, token_prefix, token_suffix)


if __name__ == "__main__":
    # Small, deterministic synthetic setup consistent with the module:
    #   ctx_init = 'a photo of a' -> n_ctx = 4
    #   tokenizer max_length (seq_len) -> 16 here (CLIP uses 77; scaled down)
    #   ctx_dim -> 128 (CLIP text width scaled down; lane-aligned)
    n_cls = 10
    n_ctx = 4
    seq_len = 16
    ctx_dim = 128
    suffix_len = seq_len - 1 - n_ctx
    dtype = jnp.float32

    key = jax.random.PRNGKey(0)
    k_ctx, k_pre, k_suf = jax.random.split(key, 3)

    # Deterministic stand-ins for the token-embedding lookups done in __init__.
    ctx = (0.02 * jax.random.normal(k_ctx, (n_ctx, ctx_dim))).astype(dtype)              # self.ctx
    token_prefix = jax.random.normal(k_pre, (n_cls, 1, ctx_dim)).astype(dtype)           # embedding[:, :1, :]
    token_suffix = jax.random.normal(k_suf, (n_cls, suffix_len, ctx_dim)).astype(dtype)  # embedding[:, 1+n_ctx:, :]

    # Pure-JAX reference of the 'end' branch.
    ctx_exp = jnp.broadcast_to(ctx[None, :, :], (n_cls, n_ctx, ctx_dim))
    ref = jnp.concatenate([token_prefix, ctx_exp, token_suffix], axis=1)

    # 1) Default path: heuristic classes-per-block (all 10 classes fit in one block).
    prompts = prompt_learner_forward(ctx, token_prefix, token_suffix)
    prompts = jax.block_until_ready(prompts)
    assert prompts.shape == (n_cls, seq_len, ctx_dim), prompts.shape
    assert prompts.dtype == dtype
    assert jnp.allclose(prompts, ref), "mismatch vs reference (default block size)"

    # 2) Explicit smaller block that does not divide n_cls (exercises the partial
    #    trailing block handled by the pl.cdiv-sized grid).
    prompts_tiled = prompt_learner_forward(
        ctx, token_prefix, token_suffix, classes_per_block=4
    )
    prompts_tiled = jax.block_until_ready(prompts_tiled)
    assert jnp.allclose(prompts_tiled, ref), "mismatch vs reference (tiled block size)"

    print("KERNEL_OK")
</pallas_src>

<mosaic_0001>
module attributes {stable_mosaic.version = 11 : i64} {
  func.func @_prompt_concat_kernel(%arg0: i32, %arg1: memref<4x128xf32, #tpu.memory_space<vmem>>, %arg2: memref<10x1x128xf32, #tpu.memory_space<vmem>>, %arg3: memref<10x11x128xf32, #tpu.memory_space<vmem>>, %arg4: memref<10x16x128xf32, #tpu.memory_space<vmem>>) attributes {dimension_semantics = [#tpu.dimension_semantics<parallel>], iteration_bounds = array<i64: 1>, scalar_prefetch = 0 : i64, scratch_operands = 0 : i64, tpu.core_type = #tpu.core_type<tc>, window_params = [{pipeline_mode = #tpu.pipeline_mode<synchronous>, transform_indices = @transform_0, window_bounds = array<i64: 4, 128>}, {transform_indices = @transform_1, window_bounds = array<i64: 10, 1, 128>}, {transform_indices = @transform_2, window_bounds = array<i64: 10, 11, 128>}, {transform_indices = @transform_3, window_bounds = array<i64: 10, 16, 128>}]} {
    %c0 = arith.constant 0 : index
    %c0_0 = arith.constant 0 : index
    %c0_1 = arith.constant 0 : index
    %0 = vector.load %arg2[%c0, %c0_0, %c0_1] : memref<10x1x128xf32, #tpu.memory_space<vmem>>, vector<10x1x128xf32>
    %c0_2 = arith.constant 0 : index
    %c0_3 = arith.constant 0 : index
    %c0_4 = arith.constant 0 : index
    %1 = vector.load %arg4[%c0_2, %c0_3, %c0_4] : memref<10x16x128xf32, #tpu.memory_space<vmem>>, vector<10x1x128xf32>
    tpu.vector_store %arg4[%c0_2, %c0_3, %c0_4], %0 {strides = array<i32>} : memref<10x16x128xf32, #tpu.memory_space<vmem>>, vector<10x1x128xf32>,
    %c0_5 = arith.constant 0 : index
    %c0_6 = arith.constant 0 : index
    %2 = vector.load %arg1[%c0_5, %c0_6] : memref<4x128xf32, #tpu.memory_space<vmem>>, vector<4x128xf32>
    %3 = vector.shape_cast %2 : vector<4x128xf32> to vector<1x4x128xf32>
    %4 = vector.shape_cast %3 : vector<1x4x128xf32> to vector<1x4x128xf32>
    %5 = vector.broadcast %4 : vector<1x4x128xf32> to vector<10x4x128xf32>
    %c0_7 = arith.constant 0 : index
    %c1 = arith.constant 1 : index
    %c0_8 = arith.constant 0 : index
    %6 = vector.load %arg4[%c0_7, %c1, %c0_8] : memref<10x16x128xf32, #tpu.memory_space<vmem>>, vector<10x4x128xf32>
    tpu.vector_store %arg4[%c0_7, %c1, %c0_8], %5 {strides = array<i32>} : memref<10x16x128xf32, #tpu.memory_space<vmem>>, vector<10x4x128xf32>,
    %c0_9 = arith.constant 0 : index
    %c0_10 = arith.constant 0 : index
    %c0_11 = arith.constant 0 : index
    %7 = vector.load %arg3[%c0_9, %c0_10, %c0_11] : memref<10x11x128xf32, #tpu.memory_space<vmem>>, vector<10x11x128xf32>
    %c0_12 = arith.constant 0 : index
    %c5 = arith.constant 5 : index
    %c0_13 = arith.constant 0 : index
    %8 = vector.load %arg4[%c0_12, %c5, %c0_13] : memref<10x16x128xf32, #tpu.memory_space<vmem>>, vector<10x11x128xf32>
    tpu.vector_store %arg4[%c0_12, %c5, %c0_13], %7 {strides = array<i32>} : memref<10x16x128xf32, #tpu.memory_space<vmem>>, vector<10x11x128xf32>,
    return
  }
  func.func @transform_0(%arg0: i32) -> (i32, i32) {
    %c0_i32 = arith.constant 0 : i32
    %c0_i32_0 = arith.constant 0 : i32
    %c0_i32_1 = arith.constant 0 : i32
    return %c0_i32, %c0_i32_0 : i32, i32
  }
  func.func @transform_1(%arg0: i32) -> (i32, i32, i32) {
    %c0_i32 = arith.constant 0 : i32
    %c0_i32_0 = arith.constant 0 : i32
    %c0_i32_1 = arith.constant 0 : i32
    return %arg0, %c0_i32, %c0_i32_0 : i32, i32, i32
  }
  func.func @transform_2(%arg0: i32) -> (i32, i32, i32) {
    %c0_i32 = arith.constant 0 : i32
    %c0_i32_0 = arith.constant 0 : i32
    %c0_i32_1 = arith.constant 0 : i32
    return %arg0, %c0_i32, %c0_i32_0 : i32, i32, i32
  }
  func.func @transform_3(%arg0: i32) -> (i32, i32, i32) {
    %c0_i32 = arith.constant 0 : i32
    %c0_i32_0 = arith.constant 0 : i32
    %c0_i32_1 = arith.constant 0 : i32
    return %arg0, %c0_i32, %c0_i32_0 : i32, i32, i32
  }
}

</mosaic_0001>

<bundles_post_ra>
// kernel: tpu_custom_call.1
= control target key start
LH: loop header
LB: loop body
LE: loop exit
PB: predicated region body
PF: predicated region fallthrough
CT: control target
= control target key end

     0   :  { %8 = vsyncpa [#allocation3], 0  ;;  %s327_s0 = inlined_call_operand.hbm [shape: f32[4,128], index: 0, kind: input, shape index: {}]   ;;  %s328_s1 = inlined_call_operand.hbm [shape: f32[10,1,128], index: 1, kind: input, shape index: {}]   ;;  %s329_s2 = inlined_call_operand.hbm [shape: f32[10,11,128], index: 2, kind: input, shape index: {}]   ;;  %s330_s3 = inlined_call_operand.hbm [shape: f32[10,16,128], index: 3, kind: output, shape index: {}]  }
   0x1   :  { %9 = vsyncpa [#allocation6], 0 }
   0x2   :  { %10 = vsyncpa [#allocation4], 0  ;;  %s245_s12 = smov [#allocation5]   ;;  %s151_s16 = scalar_lea.hbm %s328_s1, 160 }
   0x3   :  { %s26_s13 = sshll.u32 %s245_s12, 4  ;;  %p152_p0 = scmp.ne.s32.totalorder %s328_s1, %s151_s16  ;;  %s27_s13 = int_to_ptr.vmem [resolvable:$true] %s26_s13 }
   0x4   :  { %p155_p1 = scmp.lt.u32.totalorder %s151_s16, %s328_s1 }
   0x6   :  { %p157_p2 = pnand %p155_p1, %p152_p0 }
   0x8   :  { %160 = shalt.err (!%p157_p2)
}
   0x9   :  { %s161_s21 = scalar_lea.vmem %s27_s13, 160  ;;  %p166_p4 = scmp.lt.s32.totalorder %s27_s13, %s27_s13 }
   0xa   :  { %p162_p3 = scmp.ne.s32.totalorder %s27_s13, %s161_s21  ;;  %p167_p5 = scmp.lt.s32.totalorder %s161_s21, %s161_s21 }
   0xc   :  { %p168_p6 = por %p167_p5, %p166_p4 }
   0xe   :  { %p169_p7 = pnand %p168_p6, %p162_p3 }
  0x10   :  { %172 = shalt.err (!%p169_p7)
}
  0x11   :  { %s246_s22 = smov 16   ;;  %s247_s23 = smov 1  }
  0x12   :  { %32 = dma.hbm_to_vmem [thread:$0]  %s328_s1, 160, %s27_s13, [#allocation6], %s246_s22, %s246_s22, %s247_s23  }
  0x13   :  { %s248_s26 = smov [#allocation2]   ;;  %s249_s28 = smov [#allocation7]  }
  0x14   :  { %s17_s27 = sshll.u32 %s248_s26, 4  ;;  %s38_s29 = sshll.u32 %s249_s28, 4  ;;  %s18_s27 = int_to_ptr.vmem [resolvable:$true] %s17_s27  ;;  %s39_s29 = int_to_ptr.vmem [resolvable:$true] %s38_s29 }
  0x15   :  { %s173_s5 = scalar_lea.hbm %s327_s0, 64 }
  0x16   :  { %p174_p8 = scmp.ne.s32.totalorder %s327_s0, %s173_s5  ;;  %p177_p9 = scmp.lt.u32.totalorder %s173_s5, %s327_s0 }
  0x18   :  { %p179_p10 = pnand %p177_p9, %p174_p8 }
  0x1a   :  { %182 = shalt.err (!%p179_p10)
}
  0x1b   :  { %s183_s1 = scalar_lea.vmem %s18_s27, 64  ;;  %p188_p12 = scmp.lt.s32.totalorder %s18_s27, %s18_s27 }
  0x1c   :  { %p184_p11 = scmp.ne.s32.totalorder %s18_s27, %s183_s1  ;;  %p189_p13 = scmp.lt.s32.totalorder %s183_s1, %s183_s1 }
  0x1e   :  { %p190_p0 = por %p189_p13, %p188_p12 }
  0x20   :  { %p191_p1 = pnand %p190_p0, %p184_p11 }
  0x22   :  { %194 = shalt.err (!%p191_p1)
}
  0x23   :  { %20 = dma.hbm_to_vmem [thread:$0]  %s327_s0, 64, %s18_s27, [#allocation3]  }
  0x24   :  { %s195_s14 = scalar_lea.hbm %s329_s2, 2560 }
  0x25   :  { %p196_p2 = scmp.ne.s32.totalorder %s329_s2, %s195_s14  ;;  %p199_p3 = scmp.lt.u32.totalorder %s195_s14, %s329_s2 }
  0x27   :  { %p201_p4 = pnand %p199_p3, %p196_p2 }
  0x29   :  { %204 = shalt.err (!%p201_p4)
}
  0x2a   :  { %s205_s19 = scalar_lea.vmem %s39_s29, 2560  ;;  %p210_p6 = scmp.lt.s32.totalorder %s39_s29, %s39_s29 }
  0x2b   :  { %p206_p5 = scmp.ne.s32.totalorder %s39_s29, %s205_s19  ;;  %p211_p7 = scmp.lt.s32.totalorder %s205_s19, %s205_s19 }
  0x2d   :  { %p212_p8 = por %p211_p7, %p210_p6 }
  0x2f   :  { %p213_p9 = pnand %p212_p8, %p206_p5 }
  0x31   :  { %216 = shalt.err (!%p213_p9)
}
  0x32   :  { %s250_s0 = smov 128   ;;  %s251_s20 = smov 8  }
  0x33   :  { %44 = dma.hbm_to_vmem [thread:$0]  %s329_s2, 2560, %s39_s29, [#allocation6], %s250_s0, %s250_s0, %s251_s20  }
  0x34   :  { %239 = dma.done.wait [#allocation3], 64  }
  0x35   :  { %240 = vsyncadd [#allocation3], 4294967232 }
  0x36   :  { %241 = dma.done.wait [#allocation6], 2720  }
  0x37   :  { %242 = vsyncadd [#allocation6], 4294964576  ;;  %v54_v0 = vld [vmem:[#allocation5] sm:$0x1]  ;;  %v55_v1 = vld [vmem:[#allocation5 + $0x1] sm:$0x1] }
  0x38   :  { %v56_v2 = vld [vmem:[#allocation5 + $0x2] sm:$0x1]  ;;  %64 = vst [vmem:[#allocation8] sm:$0x1] %v54_v0  ;;  %65 = vst [vmem:[#allocation8 + $0x10] sm:$0x1] %v55_v1 }
  0x39   :  { %66 = vst [vmem:[#allocation8 + $0x20] sm:$0x1] %v56_v2  ;;  %v57_v3 = vld [vmem:[#allocation5 + $0x3] sm:$0x1]  ;;  %v58_v4 = vld [vmem:[#allocation5 + $0x4] sm:$0x1] }
  0x3a   :  { %v59_v5 = vld [vmem:[#allocation5 + $0x5] sm:$0x1]  ;;  %67 = vst [vmem:[#allocation8 + $0x30] sm:$0x1] %v57_v3  ;;  %68 = vst [vmem:[#allocation8 + $0x40] sm:$0x1] %v58_v4 }
  0x3b   :  { %69 = vst [vmem:[#allocation8 + $0x50] sm:$0x1] %v59_v5  ;;  %v60_v6 = vld [vmem:[#allocation5 + $0x6] sm:$0x1]  ;;  %v61_v7 = vld [vmem:[#allocation5 + $0x7] sm:$0x1] }
  0x3c   :  { %v62_v8 = vld [vmem:[#allocation5 + $0x8] sm:$0x1]  ;;  %70 = vst [vmem:[#allocation8 + $0x60] sm:$0x1] %v60_v6  ;;  %71 = vst [vmem:[#allocation8 + $0x70] sm:$0x1] %v61_v7 }
  0x3d   :  { %72 = vst [vmem:[#allocation8 + $0x80] sm:$0x1] %v62_v8  ;;  %v63_v9 = vld [vmem:[#allocation5 + $0x9] sm:$0x1]  ;;  %v74_v10 = vld [vmem:[#allocation2] sm:$0xf] }
  0x3e   :  { %v85_v11 = vld [vmem:[#allocation7] sm:$0xff]  ;;  %73 = vst [vmem:[#allocation8 + $0x90] sm:$0x1] %v63_v9  ;;  %75 = vst [vmem:[#allocation8 + $0x1] sm:$0xf] %v74_v10  ;;  %v87_v13 = vld [vmem:[#allocation7 + $0x10] sm:$0xff] }
  0x3f   :  { %76 = vst [vmem:[#allocation8 + $0x11] sm:$0xf] %v74_v10  ;;  %77 = vst [vmem:[#allocation8 + $0x21] sm:$0xf] %v74_v10  ;;  %v86_v12 = vld [vmem:[#allocation7 + $0x8] sm:$0x7] }
  0x40   :  { %78 = vst [vmem:[#allocation8 + $0x31] sm:$0xf] %v74_v10  ;;  %79 = vst [vmem:[#allocation8 + $0x41] sm:$0xf] %v74_v10  ;;  %v88_v14 = vld [vmem:[#allocation7 + $0x18] sm:$0x7] }
  0x41   :  { %80 = vst [vmem:[#allocation8 + $0x51] sm:$0xf] %v74_v10  ;;  %81 = vst [vmem:[#allocation8 + $0x61] sm:$0xf] %v74_v10  ;;  %v89_v15 = vld [vmem:[#allocation7 + $0x20] sm:$0xff]  ;;  %v91_v17 = vld [vmem:[#allocation7 + $0x30] sm:$0xff] }
  0x42   :  { %82 = vst [vmem:[#allocation8 + $0x71] sm:$0xf] %v74_v10  ;;  %83 = vst [vmem:[#allocation8 + $0x81] sm:$0xf] %v74_v10  ;;  %v90_v16 = vld [vmem:[#allocation7 + $0x28] sm:$0x7] }
  0x43   :  { %84 = vst [vmem:[#allocation8 + $0x91] sm:$0xf] %v74_v10  ;;  %105 = vst [vmem:[#allocation8 + $0x5] sm:$0xff] %v85_v11  ;;  %v92_v18 = vld [vmem:[#allocation7 + $0x38] sm:$0x7]  ;;  %v93_v19 = vld [vmem:[#allocation7 + $0x40] sm:$0xff] }
  0x44   :  { %106 = vst [vmem:[#allocation8 + $0xd] sm:$0x7] %v86_v12  ;;  %107 = vst [vmem:[#allocation8 + $0x15] sm:$0xff] %v87_v13  ;;  %v94_v20 = vld [vmem:[#allocation7 + $0x48] sm:$0x7]  ;;  %s252_s2 = smov [#allocation8]  }
  0x45   :  { %108 = vst [vmem:[#allocation8 + $0x1d] sm:$0x7] %v88_v14  ;;  %109 = vst [vmem:[#allocation8 + $0x25] sm:$0xff] %v89_v15  ;;  %s130_s23 = sshll.u32 %s252_s2, 4  ;;  %v95_v21 = vld [vmem:[#allocation7 + $0x50] sm:$0xff]  ;;  %v97_v23 = vld [vmem:[#allocation7 + $0x60] sm:$0xff]  ;;  %s131_s23 = int_to_ptr.vmem [resolvable:$true] %s130_s23 }
  0x46   :  { %110 = vst [vmem:[#allocation8 + $0x2d] sm:$0x7] %v90_v16  ;;  %111 = vst [vmem:[#allocation8 + $0x35] sm:$0xff] %v91_v17  ;;  %v96_v22 = vld [vmem:[#allocation7 + $0x58] sm:$0x7]  ;;  %v99_v25 = vld [vmem:[#allocation7 + $0x70] sm:$0xff]  ;;  %p222_p11 = scmp.lt.s32.totalorder %s131_s23, %s131_s23 }
  0x47   :  { %112 = vst [vmem:[#allocation8 + $0x3d] sm:$0x7] %v92_v18  ;;  %113 = vst [vmem:[#allocation8 + $0x45] sm:$0xff] %v93_v19  ;;  %v98_v24 = vld [vmem:[#allocation7 + $0x68] sm:$0x7]  ;;  %v101_v27 = vld [vmem:[#allocation7 + $0x80] sm:$0xff] }
  0x48   :  { %114 = vst [vmem:[#allocation8 + $0x4d] sm:$0x7] %v94_v20  ;;  %115 = vst [vmem:[#allocation8 + $0x55] sm:$0xff] %v95_v21  ;;  %v100_v26 = vld [vmem:[#allocation7 + $0x78] sm:$0x7]  ;;  %v103_v29 = vld [vmem:[#allocation7 + $0x90] sm:$0xff] }
  0x49   :  { %116 = vst [vmem:[#allocation8 + $0x5d] sm:$0x7] %v96_v22  ;;  %117 = vst [vmem:[#allocation8 + $0x65] sm:$0xff] %v97_v23  ;;  %v102_v28 = vld [vmem:[#allocation7 + $0x88] sm:$0x7]  ;;  %s217_s24 = scalar_lea.vmem %s131_s23, 2560 }
  0x4a   :  { %118 = vst [vmem:[#allocation8 + $0x6d] sm:$0x7] %v98_v24  ;;  %119 = vst [vmem:[#allocation8 + $0x75] sm:$0xff] %v99_v25  ;;  %v104_v30 = vld [vmem:[#allocation7 + $0x98] sm:$0x7]  ;;  %p218_p10 = scmp.ne.s32.totalorder %s131_s23, %s217_s24  ;;  %p223_p12 = scmp.lt.s32.totalorder %s217_s24, %s217_s24 }
  0x4b   :  { %120 = vst [vmem:[#allocation8 + $0x7d] sm:$0x7] %v100_v26  ;;  %121 = vst [vmem:[#allocation8 + $0x85] sm:$0xff] %v101_v27 }
  0x4c   :  { %122 = vst [vmem:[#allocation8 + $0x8d] sm:$0x7] %v102_v28  ;;  %123 = vst [vmem:[#allocation8 + $0x95] sm:$0xff] %v103_v29  ;;  %p224_p13 = por %p223_p12, %p222_p11 }
  0x4d   :  { %124 = vst [vmem:[#allocation8 + $0x9d] sm:$0x7] %v104_v30 }
  0x4e   :  { %p225_p0 = pnand %p224_p13, %p218_p10 }
  0x50   :  { %228 = shalt.err (!%p225_p0)
}
  0x51   :  { %s229_s27 = scalar_lea.hbm %s330_s3, 2560 }
  0x52   :  { %p230_p1 = scmp.ne.s32.totalorder %s330_s3, %s229_s27  ;;  %p233_p2 = scmp.lt.u32.totalorder %s229_s27, %s330_s3 }
  0x54   :  { %p235_p3 = pnand %p233_p2, %p230_p1 }
  0x56   :  { %238 = shalt.err (!%p235_p3)
}
  0x57   :  { %136 = dma.vmem_to_hbm [thread:$0]  %s131_s23, 2560, %s330_s3, [#allocation4], %s250_s0, %s250_s0, %s251_s20  }
  0x58   :  { %243 = dma.done.wait [#allocation4], 2560  }
  0x59   :  { %244 = vsyncadd [#allocation4], 4294964736 }
  0x5a   :  { %140 = vsyncpa [#allocation3], 1 }
  0x5b   :  { %141 = vsyncpa [#allocation6], 1 }
  0x5c   :  { %142 = vsyncpa [#allocation4], 1 }

</bundles_post_ra>
